<compile_context>
chip_gen: v7x
topology: tpu7x:2x2x1
jax: 0.10.0
libtpu: 0.0.40
codegen_flags: <defaults>
</compile_context>

<pallas_src>
import math
import functools

import jax
import jax.numpy as jnp
import numpy as np
from jax.experimental import pallas as pl
from jax.experimental.pallas import tpu as pltpu


# ----------------------------------------------------------------------------
# Kernel
# ----------------------------------------------------------------------------
def edge_attention_kernel(
    x_ref,        # (N, hidden)          node features
    wqkv_ref,     # (3*hidden, hidden)   rows = [scale*Wq_p; Wk_p; Wv_p], (out, in)
    hp_hd_ref,    # (H, hidden)          0/1 head-membership (interleaved layout)
    wo_ref,       # (hidden, hidden)     output projection, columns permuted
    bo_ref,       # (1, hidden)
    src_ref,      # (1, TE) int32        source node id per edge
    tgt_ref,      # (1, TE) int32        target node id per edge (== N for padding)
    bias_ref,     # (H, TE)              precomputed edge bias (We @ edge_attr^T)
    o_ref,        # (N, hidden)          output
    qkv_s,        # VMEM (3*hidden, N)   fused Q/K/V (transposed layout)
    segmax_s,     # VMEM (N, H) f32      running per-target-node max
    segsum_s,     # VMEM (N, H) f32      running exp-sum
    agg_s,        # VMEM (N, hidden) f32 running exp-weighted V aggregate
    *, num_nodes, hidden, num_heads, head_dim, block_e, mxu_dtype,
):
    f32 = jnp.float32
    NEG = f32(-1e30)                              # finite sentinel (safe in matmuls)
    C00 = (((0,), (0,)), ((), ()))                # contract lhs dim0 with rhs dim0
    C11 = (((1,), (1,)), ((), ()))                # contract lhs dim1 with rhs dim1

    j = pl.program_id(0)                          # edge block index
    last_j = pl.num_programs(0) - 1

    # ---- one-time init: fused QKV projection + accumulator reset -----------
    @pl.when(j == 0)
    def _init():
        # (3*hidden, N) = Wqkv (out, in) . x^T ; rows slice cleanly on sublanes.
        qkv_s[...] = jax.lax.dot_general(
            wqkv_ref[...], x_ref[...], C11,
            preferred_element_type=f32).astype(qkv_s.dtype)
        segmax_s[...] = jnp.full(segmax_s.shape, NEG, f32)
        segsum_s[...] = jnp.zeros(segsum_s.shape, f32)
        agg_s[...] = jnp.zeros(agg_s.shape, f32)

    q_t = qkv_s[0 * hidden:1 * hidden, :]         # (hidden, N)  (already * scale)
    k_t = qkv_s[1 * hidden:2 * hidden, :]
    v_t = qkv_s[2 * hidden:3 * hidden, :]

    # ---- per-block one-hots, built in registers (never stored to HBM) ------
    src_ids = src_ref[...]                        # (1, TE) int32
    tgt_ids = tgt_ref[...]                        # (1, TE) int32
    node_iota = jax.lax.broadcasted_iota(jnp.int32, (num_nodes, block_e), 0)
    src_oh_t = (node_iota == src_ids).astype(mxu_dtype)   # (N, TE)
    tgt_mask = node_iota == tgt_ids                        # (N, TE) bool
    tgt_oh_t = tgt_mask.astype(mxu_dtype)                  # (N, TE)
    valid = tgt_ids < num_nodes                            # (1, TE); padding -> False

    # Gathers Q[src], K[tgt], V[tgt] as matmuls against the one-hot block (MXU).
    q_src_t = jnp.dot(q_t, src_oh_t, preferred_element_type=f32)   # (hidden, TE)
    k_tgt_t = jnp.dot(k_t, tgt_oh_t, preferred_element_type=f32)   # (hidden, TE)
    v_tgt_t = jnp.dot(v_t, tgt_oh_t, preferred_element_type=f32)   # (hidden, TE)

    # Per-head scores (f32 pooling): heads on sublanes, edges (x128) on lanes.
    score = jnp.dot(hp_hd_ref[...], q_src_t * k_tgt_t,
                    preferred_element_type=f32)                    # (H, TE)
    score = score + bias_ref[...]                                  # precomputed bias

    # ---- online softmax: block max -> rescale -> accumulate ----------------
    m_old = segmax_s[...]                                          # (N, H)
    cols = []
    for h in range(num_heads):               # static unroll; each (N, TE) select
        masked = jnp.where(tgt_mask, score[h:h + 1, :], NEG)       # is consumed
        cols.append(jnp.max(masked, axis=1, keepdims=True))        # immediately
    m_blk = jnp.concatenate(cols, axis=1)                          # (N, H)
    m_new = jnp.maximum(m_old, m_blk)
    if mxu_dtype != jnp.float32:
        # Keep the stored max identical to the gathered (MXU-dtype) max.
        m_new = m_new.astype(mxu_dtype).astype(f32)
    alpha = jnp.exp(m_old - m_new)                                 # (N, H), in [0,1]

    # Gather each edge's (new) segment max: (H, TE).
    m_edge = jax.lax.dot_general(m_new.astype(mxu_dtype), tgt_oh_t, C00,
                                 preferred_element_type=f32)
    shifted = jnp.where(valid, score - m_edge, NEG)                # <= 0
    exp_s = jnp.exp(shifted)                                       # (H, TE)

    # Segment exp-sum: rescale running sum, scatter-add this block (N, H).
    segsum_s[...] = segsum_s[...] * alpha + jax.lax.dot_general(
        tgt_oh_t, exp_s.astype(mxu_dtype), C11, preferred_element_type=f32)

    # exp-weighted V.  Head-interleaved hidden layout => broadcast over head_dim
    # is a plain sublane tile (concat), not a K=H matmul.
    exp_full_t = jnp.concatenate([exp_s] * head_dim, axis=0)       # (hidden, TE)
    weighted_t = (exp_full_t * v_tgt_t).astype(mxu_dtype)          # (hidden, TE)

    alpha_full = jnp.concatenate([alpha] * head_dim, axis=1)       # (N, hidden)
    agg_s[...] = agg_s[...] * alpha_full + jax.lax.dot_general(
        tgt_oh_t, weighted_t, C11, preferred_element_type=f32)

    segmax_s[...] = m_new

    # ---- finalize: normalize by segment sums + output projection -----------
    @pl.when(j == last_j)
    def _final():
        inv = pl.reciprocal(segsum_s[...] + f32(1e-16), approx=False)   # (N, H)
        inv_full = jnp.concatenate([inv] * head_dim, axis=1)            # (N, hidden)
        out = jax.lax.dot_general(agg_s[...] * inv_full, wo_ref[...],
                                  C11, preferred_element_type=f32)
        o_ref[...] = (out + bo_ref[...]).astype(o_ref.dtype)


# ----------------------------------------------------------------------------
# Wrapper
# ----------------------------------------------------------------------------
def edge_attention_pallas(x, edge_index, edge_attr, params, num_heads,
                          *, block_edges=1024, mxu_dtype=jnp.float32):
    # block_edges: 1024-2048 on v5e/v6e (128 MiB VMEM); use 256-512 on v7x (64 MiB).
    N, hidden = x.shape
    E = edge_index.shape[1]
    assert hidden % num_heads == 0
    head_dim = hidden // num_heads
    scale = 1.0 / math.sqrt(head_dim)

    Wq, Wk, Wv, We, Wo, bo = params

    # Head-interleaved permutation of the hidden axis: new index j = d*H + h.
    # Applied to Wq/Wk/Wv rows and Wo columns; mathematically identical output.
    h_of = jnp.arange(hidden, dtype=jnp.int32) % num_heads
    d_of = jnp.arange(hidden, dtype=jnp.int32) // num_heads
    perm = h_of * head_dim + d_of                          # old index per new slot

    wqkv = jnp.concatenate([Wq[perm] * scale, Wk[perm], Wv[perm]],
                           axis=0).astype(jnp.float32)     # (3*hidden, hidden)
    wo_p = Wo[:, perm].astype(jnp.float32)                 # (hidden, hidden)
    hp_hd = (jnp.arange(num_heads, dtype=jnp.int32)[:, None]
             == h_of[None, :]).astype(jnp.float32)         # (H, hidden)

    # Edge-block tiling: lane-dense, 128-aligned.  Padded edges get tgt == N.
    te = max(128, min(block_edges, ((E + 127) // 128) * 128))
    e_pad = ((E + te - 1) // te) * te
    nb = e_pad // te
    pad = e_pad - E

    src_row = jnp.pad(edge_index[0].astype(jnp.int32), (0, pad),
                      constant_values=0).reshape(1, e_pad)
    tgt_row = jnp.pad(edge_index[1].astype(jnp.int32), (0, pad),
                      constant_values=N).reshape(1, e_pad)

    # Edge bias hoisted to a plain XLA matmul (K = edge_dim under-fills the MXU).
    bias = jnp.pad(We.astype(jnp.float32) @ edge_attr.astype(jnp.float32).T,
                   ((0, 0), (0, pad)))                     # (H, e_pad)
    bo2 = bo.reshape(1, hidden).astype(jnp.float32)
    x32 = x.astype(jnp.float32)

    kernel = functools.partial(
        edge_attention_kernel,
        num_nodes=N, hidden=hidden, num_heads=num_heads, head_dim=head_dim,
        block_e=te, mxu_dtype=mxu_dtype)

    def full(shape):
        return pl.BlockSpec(shape, lambda j, _n=len(shape): (0,) * _n)

    in_specs = [
        full((N, hidden)),                                   # x
        full((3 * hidden, hidden)),                          # wqkv
        full((num_heads, hidden)),                           # hp_hd
        full((hidden, hidden)),                              # Wo (permuted cols)
        full((1, hidden)),                                   # bo
        pl.BlockSpec((1, te), lambda j: (0, j)),             # src ids
        pl.BlockSpec((1, te), lambda j: (0, j)),             # tgt ids
        pl.BlockSpec((num_heads, te), lambda j: (0, j)),     # edge bias
    ]
    out_spec = full((N, hidden))

    # Advisory cost estimate for XLA's scheduler (single pass over edges).
    flops = int(
        2 * 3 * hidden * hidden * N                          # fused QKV projection
        + 2 * e_pad * (4 * hidden * N                        # q/k/v gathers + agg scatter
                       + num_heads * hidden                  # head pooling
                       + 2 * num_heads * N)                  # segmax gather + segsum scatter
        + 2 * nb * N * hidden                                # accumulator rescales
        + 2 * N * hidden * hidden)                           # output projection
    transcendentals = int(e_pad * num_heads + nb * N * num_heads)
    bytes_accessed = int(4 * (x32.size + wqkv.size + hp_hd.size + wo_p.size
                              + hidden + 2 * e_pad + num_heads * e_pad
                              + N * hidden))
    cost = pl.CostEstimate(flops=flops, transcendentals=transcendentals,
                           bytes_accessed=bytes_accessed)

    # VMEM budget: residents + scratch + double-buffered edge blocks + temporaries,
    # clamped to the device's actual VMEM capacity (64 MiB/TC on v7x).
    mxu_bytes = jnp.dtype(mxu_dtype).itemsize
    vmem_need = int(
        4 * (x32.size + wqkv.size + hp_hd.size + wo_p.size + hidden + N * hidden)
        + mxu_bytes * 3 * hidden * N
        + 4 * (2 * N * num_heads + N * hidden)
        + 2 * (4 * 2 * te + 4 * num_heads * te)
        + mxu_bytes * 2 * N * te
        + 4 * (4 * hidden * te + 6 * num_heads * te))
    try:
        vmem_cap = int(pltpu.get_tpu_info().vmem_capacity_bytes)
    except Exception:
        vmem_cap = 64 * 1024 * 1024
    vmem_limit = int(min(vmem_cap - 2 * 1024 * 1024,
                         max(32 * 1024 * 1024, 2 * vmem_need)))

    out = pl.pallas_call(
        kernel,
        grid=(nb,),
        in_specs=in_specs,
        out_specs=out_spec,
        out_shape=jax.ShapeDtypeStruct((N, hidden), jnp.float32),
        scratch_shapes=[
            pltpu.VMEM((3 * hidden, N), mxu_dtype),     # fused QKV (transposed)
            pltpu.VMEM((N, num_heads), jnp.float32),    # running segment max
            pltpu.VMEM((N, num_heads), jnp.float32),    # running segment exp-sum
            pltpu.VMEM((N, hidden), jnp.float32),       # weighted-V aggregate
        ],
        compiler_params=pltpu.CompilerParams(
            dimension_semantics=("arbitrary",),         # sequential accumulation
            vmem_limit_bytes=vmem_limit),
        cost_estimate=cost,
    )(x32, wqkv, hp_hd, wo_p, bo2, src_row, tgt_row, bias)
    return out


# ----------------------------------------------------------------------------
# Pure-JAX reference (mirrors the PyTorch forward with segment ops).
# ----------------------------------------------------------------------------
def edge_attention_ref(x, edge_index, edge_attr, params, num_heads):
    N, hidden = x.shape
    head_dim = hidden // num_heads
    Wq, Wk, Wv, We, Wo, bo = params

    Q = (x @ Wq.T).reshape(N, num_heads, head_dim)
    K = (x @ Wk.T).reshape(N, num_heads, head_dim)
    V = (x @ Wv.T).reshape(N, num_heads, head_dim)

    src, tgt = edge_index[0], edge_index[1]
    Q_src, K_tgt, V_tgt = Q[src], K[tgt], V[tgt]

    score = (Q_src * K_tgt).sum(-1) / math.sqrt(head_dim)         # (E, H)
    score = score + edge_attr @ We.T                              # (E, H)

    seg_max = jax.ops.segment_max(score, tgt, num_segments=N)     # (N, H)
    exp_s = jnp.exp(score - seg_max[tgt])
    seg_sum = jax.ops.segment_sum(exp_s, tgt, num_segments=N)     # (N, H)
    attn = exp_s / (seg_sum[tgt] + 1e-16)                         # (E, H)

    out_edges = attn[:, :, None] * V_tgt                          # (E, H, D)
    agg = jax.ops.segment_sum(out_edges, tgt, num_segments=N)     # (N, H, D)
    return agg.reshape(N, hidden) @ Wo.T + bo


if __name__ == "__main__":
    # Small, deterministic problem.
    N, E = 16, 32
    hidden_dim, edge_dim, num_heads = 32, 8, 4

    key = jax.random.PRNGKey(0)
    kx, ke, ks, kt, k1, k2, k3, k4, k5, k6 = jax.random.split(key, 10)

    x = jax.random.normal(kx, (N, hidden_dim), dtype=jnp.float32)
    edge_attr = jax.random.normal(ke, (E, edge_dim), dtype=jnp.float32)
    src = jax.random.randint(ks, (E,), 0, N)
    tgt = jax.random.randint(kt, (E,), 0, N)
    edge_index = jnp.stack([src, tgt], axis=0)                    # (2, E)

    # Deterministic parameter init (PyTorch Linear convention: weight (out, in)).
    def init_w(k, out_f, in_f):
        bound = 1.0 / math.sqrt(in_f)
        return jax.random.uniform(k, (out_f, in_f), jnp.float32, -bound, bound)

    Wq = init_w(k1, hidden_dim, hidden_dim)
    Wk = init_w(k2, hidden_dim, hidden_dim)
    Wv = init_w(k3, hidden_dim, hidden_dim)
    We = init_w(k4, num_heads, edge_dim)
    Wo = init_w(k5, hidden_dim, hidden_dim)
    bo = jax.random.uniform(k6, (hidden_dim,), jnp.float32,
                            -1.0 / math.sqrt(hidden_dim), 1.0 / math.sqrt(hidden_dim))
    params = (Wq, Wk, Wv, We, Wo, bo)

    out_kernel = edge_attention_pallas(x, edge_index, edge_attr, params, num_heads)
    out_kernel = jax.block_until_ready(out_kernel)

    out_ref = edge_attention_ref(x, edge_index, edge_attr, params, num_heads)
    out_ref = jax.block_until_ready(out_ref)

    np.testing.assert_allclose(np.asarray(out_kernel), np.asarray(out_ref),
                               rtol=1e-4, atol=1e-4)
    print("KERNEL_OK")
</pallas_src>

<mosaic_0001>
module attributes {stable_mosaic.version = 11 : i64} {
  func.func @edge_attention_kernel(%arg0: i32, %arg1: memref<16x32xf32, #tpu.memory_space<vmem>>, %arg2: memref<96x32xf32, #tpu.memory_space<vmem>>, %arg3: memref<4x32xf32, #tpu.memory_space<vmem>>, %arg4: memref<32x32xf32, #tpu.memory_space<vmem>>, %arg5: memref<1x32xf32, #tpu.memory_space<vmem>>, %arg6: memref<1x128xi32, #tpu.memory_space<vmem>>, %arg7: memref<1x128xi32, #tpu.memory_space<vmem>>, %arg8: memref<4x128xf32, #tpu.memory_space<vmem>>, %arg9: memref<16x32xf32, #tpu.memory_space<vmem>>, %arg10: memref<96x16xf32, #tpu.memory_space<vmem>>, %arg11: memref<16x4xf32, #tpu.memory_space<vmem>>, %arg12: memref<16x4xf32, #tpu.memory_space<vmem>>, %arg13: memref<16x32xf32, #tpu.memory_space<vmem>>) attributes {dimension_semantics = [#tpu.dimension_semantics<arbitrary>], iteration_bounds = array<i64: 1>, scalar_prefetch = 0 : i64, scratch_operands = 4 : i64, tpu.core_type = #tpu.core_type<tc>, window_params = [{pipeline_mode = #tpu.pipeline_mode<synchronous>, transform_indices = @transform_0, window_bounds = array<i64: 16, 32>}, {pipeline_mode = #tpu.pipeline_mode<synchronous>, transform_indices = @transform_1, window_bounds = array<i64: 96, 32>}, {pipeline_mode = #tpu.pipeline_mode<synchronous>, transform_indices = @transform_2, window_bounds = array<i64: 4, 32>}, {pipeline_mode = #tpu.pipeline_mode<synchronous>, transform_indices = @transform_3, window_bounds = array<i64: 32, 32>}, {pipeline_mode = #tpu.pipeline_mode<synchronous>, transform_indices = @transform_4, window_bounds = array<i64: 1, 32>}, {transform_indices = @transform_5, window_bounds = array<i64: 1, 128>}, {transform_indices = @transform_6, window_bounds = array<i64: 1, 128>}, {transform_indices = @transform_7, window_bounds = array<i64: 4, 128>}, {pipeline_mode = #tpu.pipeline_mode<synchronous>, transform_indices = @transform_8, window_bounds = array<i64: 16, 32>}]} {
    %c0_i32 = arith.constant 0 : i32
    %0 = arith.cmpi eq, %arg0, %c0_i32 : i32
    %1 = arith.extui %0 : i1 to i32
    %cst = arith.constant -1.000000e+30 : f32
    %c0_i32_0 = arith.constant 0 : i32
    %2 = arith.cmpi ne, %1, %c0_i32_0 : i32
    scf.if %2 {
      %c0_42 = arith.constant 0 : index
      %c0_43 = arith.constant 0 : index
      %84 = vector.load %arg2[%c0_42, %c0_43] : memref<96x32xf32, #tpu.memory_space<vmem>>, vector<96x32xf32>
      %c0_44 = arith.constant 0 : index
      %c0_45 = arith.constant 0 : index
      %85 = vector.load %arg1[%c0_44, %c0_45] : memref<16x32xf32, #tpu.memory_space<vmem>>, vector<16x32xf32>
      %cst_46 = arith.constant dense<0.000000e+00> : vector<96x16xf32>
      %86 = tpu.matmul %84, %85, %cst_46 {dimension_numbers = #tpu.dot_dimension_numbers<[1], [1], [0], [0], [0, 0, 1, 0], [], []>} : vector<96x32xf32>, vector<16x32xf32>, vector<96x16xf32> -> vector<96x16xf32>
      %c0_47 = arith.constant 0 : index
      %c0_48 = arith.constant 0 : index
      %87 = vector.load %arg10[%c0_47, %c0_48] : memref<96x16xf32, #tpu.memory_space<vmem>>, vector<96x16xf32>
      tpu.vector_store %arg10[%c0_47, %c0_48], %86 {strides = array<i32>} : memref<96x16xf32, #tpu.memory_space<vmem>>, vector<96x16xf32>,
      %88 = vector.broadcast %cst : f32 to vector<16x4xf32>
      %c0_49 = arith.constant 0 : index
      %c0_50 = arith.constant 0 : index
      %89 = vector.load %arg11[%c0_49, %c0_50] : memref<16x4xf32, #tpu.memory_space<vmem>>, vector<16x4xf32>
      tpu.vector_store %arg11[%c0_49, %c0_50], %88 {strides = array<i32>} : memref<16x4xf32, #tpu.memory_space<vmem>>, vector<16x4xf32>,
      %cst_51 = arith.constant 0.000000e+00 : f32
      %90 = vector.broadcast %cst_51 : f32 to vector<16x4xf32>
      %c0_52 = arith.constant 0 : index
      %c0_53 = arith.constant 0 : index
      %91 = vector.load %arg12[%c0_52, %c0_53] : memref<16x4xf32, #tpu.memory_space<vmem>>, vector<16x4xf32>
      tpu.vector_store %arg12[%c0_52, %c0_53], %90 {strides = array<i32>} : memref<16x4xf32, #tpu.memory_space<vmem>>, vector<16x4xf32>,
      %cst_54 = arith.constant 0.000000e+00 : f32
      %92 = vector.broadcast %cst_54 : f32 to vector<16x32xf32>
      %c0_55 = arith.constant 0 : index
      %c0_56 = arith.constant 0 : index
      %93 = vector.load %arg13[%c0_55, %c0_56] : memref<16x32xf32, #tpu.memory_space<vmem>>, vector<16x32xf32>
      tpu.vector_store %arg13[%c0_55, %c0_56], %92 {strides = array<i32>} : memref<16x32xf32, #tpu.memory_space<vmem>>, vector<16x32xf32>,
    } else {
    }
    %c0 = arith.constant 0 : index
    %c0_1 = arith.constant 0 : index
    %3 = vector.load %arg10[%c0, %c0_1] : memref<96x16xf32, #tpu.memory_space<vmem>>, vector<32x16xf32>
    %c32 = arith.constant 32 : index
    %c0_2 = arith.constant 0 : index
    %4 = vector.load %arg10[%c32, %c0_2] : memref<96x16xf32, #tpu.memory_space<vmem>>, vector<32x16xf32>
    %c64 = arith.constant 64 : index
    %c0_3 = arith.constant 0 : index
    %5 = vector.load %arg10[%c64, %c0_3] : memref<96x16xf32, #tpu.memory_space<vmem>>, vector<32x16xf32>
    %c0_4 = arith.constant 0 : index
    %c0_5 = arith.constant 0 : index
    %6 = vector.load %arg6[%c0_4, %c0_5] : memref<1x128xi32, #tpu.memory_space<vmem>>, vector<1x128xi32>
    %c0_6 = arith.constant 0 : index
    %c0_7 = arith.constant 0 : index
    %7 = vector.load %arg7[%c0_6, %c0_7] : memref<1x128xi32, #tpu.memory_space<vmem>>, vector<1x128xi32>
    %8 = tpu.iota {dimensions = array<i32: 0>} : vector<16x128xi32>
    %9 = vector.broadcast %6 : vector<1x128xi32> to vector<16x128xi32>
    %10 = arith.cmpi eq, %8, %9 : vector<16x128xi32>
    %11 = arith.extui %10 : vector<16x128xi1> to vector<16x128xi32>
    %12 = arith.sitofp %11 : vector<16x128xi32> to vector<16x128xf32>
    %13 = vector.broadcast %7 : vector<1x128xi32> to vector<16x128xi32>
    %14 = arith.cmpi eq, %8, %13 : vector<16x128xi32>
    %15 = arith.extui %14 : vector<16x128xi1> to vector<16x128xi32>
    %16 = arith.sitofp %15 : vector<16x128xi32> to vector<16x128xf32>
    %c16_i32 = arith.constant 16 : i32
    %17 = vector.broadcast %c16_i32 : i32 to vector<1x128xi32>
    %18 = arith.cmpi slt, %7, %17 : vector<1x128xi32>
    %cst_8 = arith.constant dense<0.000000e+00> : vector<32x128xf32>
    %19 = tpu.matmul %3, %12, %cst_8 {dimension_numbers = #tpu.dot_dimension_numbers<[1], [0], [0], [1], [0, 0, 1, 1], [], []>} : vector<32x16xf32>, vector<16x128xf32>, vector<32x128xf32> -> vector<32x128xf32>
    %cst_9 = arith.constant dense<0.000000e+00> : vector<32x128xf32>
    %20 = tpu.matmul %4, %16, %cst_9 {dimension_numbers = #tpu.dot_dimension_numbers<[1], [0], [0], [1], [0, 0, 1, 1], [], []>} : vector<32x16xf32>, vector<16x128xf32>, vector<32x128xf32> -> vector<32x128xf32>
    %cst_10 = arith.constant dense<0.000000e+00> : vector<32x128xf32>
    %21 = tpu.matmul %5, %16, %cst_10 {dimension_numbers = #tpu.dot_dimension_numbers<[1], [0], [0], [1], [0, 0, 1, 1], [], []>} : vector<32x16xf32>, vector<16x128xf32>, vector<32x128xf32> -> vector<32x128xf32>
    %c0_11 = arith.constant 0 : index
    %c0_12 = arith.constant 0 : index
    %22 = vector.load %arg3[%c0_11, %c0_12] : memref<4x32xf32, #tpu.memory_space<vmem>>, vector<4x32xf32>
    %23 = arith.mulf %19, %20 : vector<32x128xf32>
    %cst_13 = arith.constant dense<0.000000e+00> : vector<4x128xf32>
    %24 = tpu.matmul %22, %23, %cst_13 {dimension_numbers = #tpu.dot_dimension_numbers<[1], [0], [0], [1], [0, 0, 1, 1], [], []>} : vector<4x32xf32>, vector<32x128xf32>, vector<4x128xf32> -> vector<4x128xf32>
    %c0_14 = arith.constant 0 : index
    %c0_15 = arith.constant 0 : index
    %25 = vector.load %arg8[%c0_14, %c0_15] : memref<4x128xf32, #tpu.memory_space<vmem>>, vector<4x128xf32>
    %26 = arith.addf %24, %25 : vector<4x128xf32>
    %c0_16 = arith.constant 0 : index
    %c0_17 = arith.constant 0 : index
    %27 = vector.load %arg11[%c0_16, %c0_17] : memref<16x4xf32, #tpu.memory_space<vmem>>, vector<16x4xf32>
    %28 = vector.extract_strided_slice %26 {offsets = [0, 0], sizes = [1, 128], strides = [1, 1]} : vector<4x128xf32> to vector<1x128xf32>
    %cst_18 = arith.constant -1.000000e+30 : f32
    %29 = vector.shape_cast %28 : vector<1x128xf32> to vector<1x128xf32>
    %30 = vector.broadcast %29 : vector<1x128xf32> to vector<16x128xf32>
    %31 = vector.broadcast %cst_18 : f32 to vector<16x128xf32>
    %32 = arith.select %14, %30, %31 : vector<16x128xi1>, vector<16x128xf32>
    %cst_19 = arith.constant dense<0xFF800000> : vector<16xf32>
    %33 = vector.multi_reduction <maximumf>, %32, %cst_19 [1] : vector<16x128xf32> to vector<16xf32>
    %34 = vector.shape_cast %33 : vector<16xf32> to vector<16x1xf32>
    %35 = vector.extract_strided_slice %26 {offsets = [1, 0], sizes = [1, 128], strides = [1, 1]} : vector<4x128xf32> to vector<1x128xf32>
    %cst_20 = arith.constant -1.000000e+30 : f32
    %36 = vector.shape_cast %35 : vector<1x128xf32> to vector<1x128xf32>
    %37 = vector.broadcast %36 : vector<1x128xf32> to vector<16x128xf32>
    %38 = vector.broadcast %cst_20 : f32 to vector<16x128xf32>
    %39 = arith.select %14, %37, %38 : vector<16x128xi1>, vector<16x128xf32>
    %cst_21 = arith.constant dense<0xFF800000> : vector<16xf32>
    %40 = vector.multi_reduction <maximumf>, %39, %cst_21 [1] : vector<16x128xf32> to vector<16xf32>
    %41 = vector.shape_cast %40 : vector<16xf32> to vector<16x1xf32>
    %42 = vector.extract_strided_slice %26 {offsets = [2, 0], sizes = [1, 128], strides = [1, 1]} : vector<4x128xf32> to vector<1x128xf32>
    %cst_22 = arith.constant -1.000000e+30 : f32
    %43 = vector.shape_cast %42 : vector<1x128xf32> to vector<1x128xf32>
    %44 = vector.broadcast %43 : vector<1x128xf32> to vector<16x128xf32>
    %45 = vector.broadcast %cst_22 : f32 to vector<16x128xf32>
    %46 = arith.select %14, %44, %45 : vector<16x128xi1>, vector<16x128xf32>
    %cst_23 = arith.constant dense<0xFF800000> : vector<16xf32>
    %47 = vector.multi_reduction <maximumf>, %46, %cst_23 [1] : vector<16x128xf32> to vector<16xf32>
    %48 = vector.shape_cast %47 : vector<16xf32> to vector<16x1xf32>
    %49 = vector.extract_strided_slice %26 {offsets = [3, 0], sizes = [1, 128], strides = [1, 1]} : vector<4x128xf32> to vector<1x128xf32>
    %cst_24 = arith.constant -1.000000e+30 : f32
    %50 = vector.shape_cast %49 : vector<1x128xf32> to vector<1x128xf32>
    %51 = vector.broadcast %50 : vector<1x128xf32> to vector<16x128xf32>
    %52 = vector.broadcast %cst_24 : f32 to vector<16x128xf32>
    %53 = arith.select %14, %51, %52 : vector<16x128xi1>, vector<16x128xf32>
    %cst_25 = arith.constant dense<0xFF800000> : vector<16xf32>
    %54 = vector.multi_reduction <maximumf>, %53, %cst_25 [1] : vector<16x128xf32> to vector<16xf32>
    %55 = vector.shape_cast %54 : vector<16xf32> to vector<16x1xf32>
    %56 = tpu.concatenate %34, %41, %48, %55 in 1 : vector<16x1xf32>, vector<16x1xf32>, vector<16x1xf32>, vector<16x1xf32> -> vector<16x4xf32>
    %57 = arith.maximumf %27, %56 : vector<16x4xf32>
    %58 = arith.subf %27, %57 : vector<16x4xf32>
    %59 = math.exp %58 : vector<16x4xf32>
    %cst_26 = arith.constant dense<0.000000e+00> : vector<4x128xf32>
    %60 = tpu.matmul %57, %16, %cst_26 {dimension_numbers = #tpu.dot_dimension_numbers<[0], [0], [1], [1], [0, 1, 1, 1], [], []>} : vector<16x4xf32>, vector<16x128xf32>, vector<4x128xf32> -> vector<4x128xf32>
    %61 = arith.subf %26, %60 : vector<4x128xf32>
    %cst_27 = arith.constant -1.000000e+30 : f32
    %62 = vector.shape_cast %18 : vector<1x128xi1> to vector<1x128xi1>
    %63 = vector.broadcast %62 : vector<1x128xi1> to vector<4x128xi1>
    %64 = vector.broadcast %cst_27 : f32 to vector<4x128xf32>
    %65 = arith.select %63, %61, %64 : vector<4x128xi1>, vector<4x128xf32>
    %66 = math.exp %65 : vector<4x128xf32>
    %c0_28 = arith.constant 0 : index
    %c0_29 = arith.constant 0 : index
    %67 = vector.load %arg12[%c0_28, %c0_29] : memref<16x4xf32, #tpu.memory_space<vmem>>, vector<16x4xf32>
    %68 = arith.mulf %67, %59 : vector<16x4xf32>
    %cst_30 = arith.constant dense<0.000000e+00> : vector<16x4xf32>
    %69 = tpu.matmul %16, %66, %cst_30 {dimension_numbers = #tpu.dot_dimension_numbers<[1], [1], [0], [0], [0, 0, 1, 0], [], []>} : vector<16x128xf32>, vector<4x128xf32>, vector<16x4xf32> -> vector<16x4xf32>
    %70 = arith.addf %68, %69 : vector<16x4xf32>
    %c0_31 = arith.constant 0 : index
    %c0_32 = arith.constant 0 : index
    %71 = vector.load %arg12[%c0_31, %c0_32] : memref<16x4xf32, #tpu.memory_space<vmem>>, vector<16x4xf32>
    tpu.vector_store %arg12[%c0_31, %c0_32], %70 {strides = array<i32>} : memref<16x4xf32, #tpu.memory_space<vmem>>, vector<16x4xf32>,
    %72 = tpu.concatenate %66, %66, %66, %66, %66, %66, %66, %66 in 0 : vector<4x128xf32>, vector<4x128xf32>, vector<4x128xf32>, vector<4x128xf32>, vector<4x128xf32>, vector<4x128xf32>, vector<4x128xf32>, vector<4x128xf32> -> vector<32x128xf32>
    %73 = arith.mulf %72, %21 : vector<32x128xf32>
    %74 = tpu.concatenate %59, %59, %59, %59, %59, %59, %59, %59 in 1 : vector<16x4xf32>, vector<16x4xf32>, vector<16x4xf32>, vector<16x4xf32>, vector<16x4xf32>, vector<16x4xf32>, vector<16x4xf32>, vector<16x4xf32> -> vector<16x32xf32>
    %c0_33 = arith.constant 0 : index
    %c0_34 = arith.constant 0 : index
    %75 = vector.load %arg13[%c0_33, %c0_34] : memref<16x32xf32, #tpu.memory_space<vmem>>, vector<16x32xf32>
    %76 = arith.mulf %75, %74 : vector<16x32xf32>
    %cst_35 = arith.constant dense<0.000000e+00> : vector<16x32xf32>
    %77 = tpu.matmul %16, %73, %cst_35 {dimension_numbers = #tpu.dot_dimension_numbers<[1], [1], [0], [0], [0, 0, 1, 0], [], []>} : vector<16x128xf32>, vector<32x128xf32>, vector<16x32xf32> -> vector<16x32xf32>
    %78 = arith.addf %76, %77 : vector<16x32xf32>
    %c0_36 = arith.constant 0 : index
    %c0_37 = arith.constant 0 : index
    %79 = vector.load %arg13[%c0_36, %c0_37] : memref<16x32xf32, #tpu.memory_space<vmem>>, vector<16x32xf32>
    tpu.vector_store %arg13[%c0_36, %c0_37], %78 {strides = array<i32>} : memref<16x32xf32, #tpu.memory_space<vmem>>, vector<16x32xf32>,
    %c0_38 = arith.constant 0 : index
    %c0_39 = arith.constant 0 : index
    %80 = vector.load %arg11[%c0_38, %c0_39] : memref<16x4xf32, #tpu.memory_space<vmem>>, vector<16x4xf32>
    tpu.vector_store %arg11[%c0_38, %c0_39], %57 {strides = array<i32>} : memref<16x4xf32, #tpu.memory_space<vmem>>, vector<16x4xf32>,
    %c0_i32_40 = arith.constant 0 : i32
    %81 = arith.cmpi eq, %arg0, %c0_i32_40 : i32
    %82 = arith.extui %81 : i1 to i32
    %c0_i32_41 = arith.constant 0 : i32
    %83 = arith.cmpi ne, %82, %c0_i32_41 : i32
    scf.if %83 {
      %c0_42 = arith.constant 0 : index
      %c0_43 = arith.constant 0 : index
      %84 = vector.load %arg12[%c0_42, %c0_43] : memref<16x4xf32, #tpu.memory_space<vmem>>, vector<16x4xf32>
      %cst_44 = arith.constant 1.000000e-16 : f32
      %85 = vector.broadcast %cst_44 : f32 to vector<16x4xf32>
      %86 = arith.addf %84, %85 : vector<16x4xf32>
      %87 = tpu.reciprocal %86 : vector<16x4xf32> -> vector<16x4xf32>
      %88 = tpu.concatenate %87, %87, %87, %87, %87, %87, %87, %87 in 1 : vector<16x4xf32>, vector<16x4xf32>, vector<16x4xf32>, vector<16x4xf32>, vector<16x4xf32>, vector<16x4xf32>, vector<16x4xf32>, vector<16x4xf32> -> vector<16x32xf32>
      %c0_45 = arith.constant 0 : index
      %c0_46 = arith.constant 0 : index
      %89 = vector.load %arg13[%c0_45, %c0_46] : memref<16x32xf32, #tpu.memory_space<vmem>>, vector<16x32xf32>
      %90 = arith.mulf %89, %88 : vector<16x32xf32>
      %c0_47 = arith.constant 0 : index
      %c0_48 = arith.constant 0 : index
      %91 = vector.load %arg4[%c0_47, %c0_48] : memref<32x32xf32, #tpu.memory_space<vmem>>, vector<32x32xf32>
      %cst_49 = arith.constant dense<0.000000e+00> : vector<16x32xf32>
      %92 = tpu.matmul %90, %91, %cst_49 {dimension_numbers = #tpu.dot_dimension_numbers<[1], [1], [0], [0], [0, 0, 1, 0], [], []>} : vector<16x32xf32>, vector<32x32xf32>, vector<16x32xf32> -> vector<16x32xf32>
      %c0_50 = arith.constant 0 : index
      %c0_51 = arith.constant 0 : index
      %93 = vector.load %arg5[%c0_50, %c0_51] : memref<1x32xf32, #tpu.memory_space<vmem>>, vector<1x32xf32>
      %94 = vector.broadcast %93 : vector<1x32xf32> to vector<16x32xf32>
      %95 = arith.addf %92, %94 : vector<16x32xf32>
      %c0_52 = arith.constant 0 : index
      %c0_53 = arith.constant 0 : index
      %96 = vector.load %arg9[%c0_52, %c0_53] : memref<16x32xf32, #tpu.memory_space<vmem>>, vector<16x32xf32>
      tpu.vector_store %arg9[%c0_52, %c0_53], %95 {strides = array<i32>} : memref<16x32xf32, #tpu.memory_space<vmem>>, vector<16x32xf32>,
    } else {
    }
    return
  }
  func.func @transform_0(%arg0: i32) -> (i32, i32) {
    %c0_i32 = arith.constant 0 : i32
    %c0_i32_0 = arith.constant 0 : i32
    %c0_i32_1 = arith.constant 0 : i32
    return %c0_i32, %c0_i32_0 : i32, i32
  }
  func.func @transform_1(%arg0: i32) -> (i32, i32) {
    %c0_i32 = arith.constant 0 : i32
    %c0_i32_0 = arith.constant 0 : i32
    %c0_i32_1 = arith.constant 0 : i32
    return %c0_i32, %c0_i32_0 : i32, i32
  }
  func.func @transform_2(%arg0: i32) -> (i32, i32) {
    %c0_i32 = arith.constant 0 : i32
    %c0_i32_0 = arith.constant 0 : i32
    %c0_i32_1 = arith.constant 0 : i32
    return %c0_i32, %c0_i32_0 : i32, i32
  }
  func.func @transform_3(%arg0: i32) -> (i32, i32) {
    %c0_i32 = arith.constant 0 : i32
    %c0_i32_0 = arith.constant 0 : i32
    %c0_i32_1 = arith.constant 0 : i32
    return %c0_i32, %c0_i32_0 : i32, i32
  }
  func.func @transform_4(%arg0: i32) -> (i32, i32) {
    %c0_i32 = arith.constant 0 : i32
    %c0_i32_0 = arith.constant 0 : i32
    %c0_i32_1 = arith.constant 0 : i32
    return %c0_i32, %c0_i32_0 : i32, i32
  }
  func.func @transform_5(%arg0: i32) -> (i32, i32) {
    %c0_i32 = arith.constant 0 : i32
    %c0_i32_0 = arith.constant 0 : i32
    return %c0_i32, %arg0 : i32, i32
  }
  func.func @transform_6(%arg0: i32) -> (i32, i32) {
    %c0_i32 = arith.constant 0 : i32
    %c0_i32_0 = arith.constant 0 : i32
    return %c0_i32, %arg0 : i32, i32
  }
  func.func @transform_7(%arg0: i32) -> (i32, i32) {
    %c0_i32 = arith.constant 0 : i32
    %c0_i32_0 = arith.constant 0 : i32
    return %c0_i32, %arg0 : i32, i32
  }
  func.func @transform_8(%arg0: i32) -> (i32, i32) {
    %c0_i32 = arith.constant 0 : i32
    %c0_i32_0 = arith.constant 0 : i32
    %c0_i32_1 = arith.constant 0 : i32
    return %c0_i32, %c0_i32_0 : i32, i32
  }
}

</mosaic_0001>

<bundles_post_ra>
// kernel: tpu_custom_call.1
= control target key start
LH: loop header
LB: loop body
LE: loop exit
PB: predicated region body
PF: predicated region fallthrough
CT: control target
= control target key end

     0   :  { %vm48_vm0 = vcmask 261120   ;;  %s1944_s0 = inlined_call_operand.vmem [shape: f32[16,32], index: 0, kind: input, shape index: {}]   ;;  %s1945_s1 = inlined_call_operand.vmem [shape: f32[96,32], index: 1, kind: input, shape index: {}]   ;;  %s1946_s2 = inlined_call_operand.vmem [shape: f32[4,32], index: 2, kind: input, shape index: {}]   ;;  %s1947_s3 = inlined_call_operand.vmem [shape: f32[32,32], index: 3, kind: input, shape index: {}]   ;;  %s1948_s4 = inlined_call_operand.vmem [shape: f32[1,32], index: 4, kind: input, shape index: {}]   ;;  %s1949_s5 = inlined_call_operand.vmem [shape: s32[1,128], index: 5, kind: input, shape index: {}]   ;;  %s1950_s6 = inlined_call_operand.vmem [shape: s32[1,128], index: 6, kind: input, shape index: {}]   ;;  %s1951_s7 = inlined_call_operand.vmem [shape: f32[4,128], index: 7, kind: input, shape index: {}]   ;;  %s1952_s8 = inlined_call_operand.hbm [shape: f32[16,32], index: 8, kind: output, shape index: {}]  }
   0x1   :  { %v46_v0 = vld [vmem:[%s1944_s0] sm:$0xff]  ;;  %v47_v1 = vld [vmem:[%s1944_s0 + $0x8] sm:$0xff]  ;;  %vm1627_vm1 = vmpackc.low %vm48_vm0, %vm48_vm0 }
   0x2   :  { %v34_v2 = vld [vmem:[%s1945_s1] sm:$0xff]  ;;  %v1458_v3 = vpack.c.bf16 %v47_v1, %v46_v0 }
   0x3   :  { %1365 = vmatprep.mubr.msk.f32.mxu0 %vm48_vm0, %v34_v2 }
   0x4   :  { %1460 = vmatprep.subr.msk.bf16.mxu0 %vm1627_vm1, %v1458_v3 }
   0x5   :  { %13 = vsyncpa [#allocation7], 0  ;;  %1463 = vmatpush3.bf16.xpose.msk.msra.mxu0 %vm1627_vm1, %v1458_v3  ;;  %v35_v5 = vld [vmem:[%s1945_s1 + $0x8] sm:$0xff]  ;;  %v36_v6 = vld [vmem:[%s1945_s1 + $0x10] sm:$0xff]  ;;  %v250_v12 = vlaneseq  ;;  %v1555_v18 = vmov 1.0|1.0  }
   0x6   :  { %v37_v7 = vld [vmem:[%s1945_s1 + $0x18] sm:$0xff]  ;;  %v38_v8 = vld [vmem:[%s1945_s1 + $0x20] sm:$0xff]  ;;  %v39_v9 = vld [vmem:[%s1945_s1 + $0x28] sm:$0xff]  ;;  %vm216_vm8 = vcmask 130048   ;;  %v1556_v50 = vmov 0.0|0.0   ;;  %vm1557_vm9 = vmmov 0  }
   0x7   :  { %v40_v10 = vld [vmem:[%s1945_s1 + $0x30] sm:$0xff]  ;;  %v41_v11 = vld [vmem:[%s1945_s1 + $0x38] sm:$0xff]  ;;  %v1664_v13 = vshrl.u32 %v250_v12, 7  ;;  %v1268_v15 = vld [vmem:[%s1949_s5] ss:$0 sm:$0xff]  ;;  %1482 = vmatprep.subr.bf16.mxu0 %v1556_v50  ;;  %v1558_v52 = vmov 0.0  }
   0x8   :  { %v1674_v16 = vld [vmem:[%s1950_s6] sm:$0x1]  ;;  %v43_v21 = vld [vmem:[%s1945_s1 + $0x48] sm:$0xff]  ;;  %v44_v25 = vld [vmem:[%s1945_s1 + $0x50] sm:$0xff]  ;;  %234 = vst.msk [vmem:[#allocation5] sm:$0xff] %vm48_vm0, %v1558_v52  ;;  %vm229_vm10 = vcmask 31744  }
   0x9   :  { %v252_v14 = vadd.s32 8, %v1664_v13  ;;  %vm257_vm2 = vcmp.eq.s32.totalorder %v1664_v13, %v1268_v15  ;;  %v1677_v17 = vsub.s32 0, %v1664_v13  ;;  %v42_v20 = vld [vmem:[%s1945_s1 + $0x40] sm:$0xff]  ;;  %v45_v26 = vld [vmem:[%s1945_s1 + $0x58] sm:$0xff]  ;;  %235 = vst.msk [vmem:[#allocation5 + $0x8] sm:$0xff] %vm48_vm0, %v1558_v52  ;;  %vm688_vm11 = vcmask 7168  }
   0xa   :  { %v566_v3 = vld [vmem:[%s1946_s2] sm:$0xf]  ;;  %232 = vst.msk [vmem:[#allocation4] sm:$0xff] %vm229_vm10, %v1558_v52  ;;  %233 = vst.msk [vmem:[#allocation4 + $0x8] sm:$0xff] %vm229_vm10, %v1558_v52  ;;  %vm691_vm12 = vcmask 15360   ;;  %vm694_vm13 = vcmask 23552  }
   0xb   :  { %vm258_vm3 = vcmp.eq.s32.totalorder %v252_v14, %v1268_v15  ;;  %v266_v19 = vrot.slane %v1674_v16, %v1677_v17  ;;  %v660_v15 = vsub.s32 1, %v1664_v13  ;;  %s1560_s2 = smov 4   ;;  %s1562_s14 = smov 12   ;;  %vm273_vm14 = vcmp.lt.s32.totalorder %v1674_v16, 16 }
   0xc   :  { %1366 = vmatmul.mubr.msk.f32.vlgmr.msra.gmra.mrb[0].mxu0 %vm48_vm0, %v35_v5  ;;  %vm1464_vm4 = vmpackc.low %vm258_vm3, %vm257_vm2  ;;  %s1563_s15 = smov 16   ;;  %s1564_s16 = smov 20   ;;  %vm907_vm2 = vcmask 1043456   ;;  %vm959_vm3 = vcmask 64512  }
   0xd   :  { %1368 = vmatprep.mubr.msk.f32.mxu0 %vm48_vm0, %v36_v6  ;;  %1465 = vmatprep.subr.msk.bf16.mxu1 %vm1464_vm4, %v1555_v18  ;;  %vm1691_vm5 = vcmp.eq.s32.totalorder %v1664_v13, %v266_v19  ;;  %vm1695_vm6 = vcmp.eq.s32.totalorder %v252_v14, %v266_v19  ;;  %s1565_s17 = smov 24   ;;  %s1566_s18 = smov 28  }
   0xe   :  { %1467 = vmatpush3.bf16.msk.msra.mxu1 %vm1464_vm4, %v1555_v18  ;;  %vm1704_vm7 = vmpackc.low %vm1695_vm6, %vm1691_vm5  ;;  %vm962_vm4 = vcmask 97280   ;;  %s1569_s5 = smov [#allocation6]  }
   0xf   :  { %1469 = vmatprep.subr.msk.bf16.mxu1 %vm1704_vm7, %v1555_v18  ;;  %1484 = vmatpush3.bf16.msk.msra.mxu0 %vm1704_vm7, %v1555_v18  ;;  %s1243_s28 = sshll.u32 %s1569_s5, 4  ;;  %s1244_s28 = int_to_ptr.vmem [resolvable:$true] %s1243_s28 }
  0x10   :  { %1369 = vmatmul.mubr.msk.f32.gmra.mrb[2].mxu0 %vm48_vm0, %v37_v7  ;;  %s1531_s6 = scalar_lea.vmem %s1244_s28, 256  ;;  %p1536_p1 = scmp.lt.s32.totalorder %s1244_s28, %s1244_s28 }
  0x11   :  { %1371 = vmatprep.mubr.msk.f32.mxu0 %vm48_vm0, %v38_v8  ;;  %p1532_p0 = scmp.ne.s32.totalorder %s1244_s28, %s1531_s6  ;;  %p1537_p2 = scmp.lt.s32.totalorder %s1531_s6, %s1531_s6 }
  0x13   :  { %p1538_p3 = por %p1537_p2, %p1536_p1 }
  0x14   :  { %1372 = vmatmul.mubr.msk.f32.gmra.mrb[4].mxu0 %vm48_vm0, %v39_v9  ;;  %v571_v9 = vld [vmem:[%s1951_s7] sm:$0xf]  ;;  %s1561_s7 = smov 8  }
  0x15   :  { %1374 = vmatprep.mubr.msk.f32.mxu0 %vm48_vm0, %v40_v10  ;;  %v670_v10 = vsub.s32 2, %v1664_v13  ;;  %p1539_p4 = pnand %p1538_p3, %p1532_p0 }
  0x18   :  { %1375 = vmatmul.mubr.msk.f32.gmra.mrb[6].mxu0 %vm48_vm0, %v41_v11 }
  0x19   :  { %1377 = vmatprep.mubr.msk.f32.mxu0 %vm48_vm0, %v42_v20 }
  0x1c   :  { %1378 = vmatmul.mubr.msk.f32.gmra.mrb[8].mxu0 %vm48_vm0, %v43_v21 }
  0x1d   :  { %1380 = vmatprep.mubr.msk.f32.mxu0 %vm48_vm0, %v44_v25  ;;  %v680_v25 = vsub.s32 3, %v1664_v13 }
  0x20   :  { %1381 = vmatmul.mubr.msk.f32.gmra.mrb[10].mxu0 %vm48_vm0, %v45_v26 }
  0x21   :  { %1428 = vmatprep.mubr.msk.f32.mxu0 %vm1557_vm9, %v1558_v52 }
  0xdf   :  { %v1367_v27 = vpop.f32.mrb[0].mxu0 }
  0xe0   :  { %218 = vst.msk [vmem:[#allocation2 + $0x8] sm:$0xff] %vm216_vm8, %v1367_v27  ;;  %v157_v28 = vpop.f32.mrb[1].mxu0 }
  0xe1   :  { %217 = vst.msk [vmem:[#allocation2] sm:$0xff] %vm216_vm8, %v157_v28 }
  0xe3   :  { %v1370_v29 = vpop.f32.mrb[2].mxu0 }
  0xe4   :  { %220 = vst.msk [vmem:[#allocation2 + $0x18] sm:$0xff] %vm216_vm8, %v1370_v29  ;;  %v167_v30 = vpop.f32.mrb[3].mxu0 }
  0xe5   :  { %219 = vst.msk [vmem:[#allocation2 + $0x10] sm:$0xff] %vm216_vm8, %v167_v30 }
  0xe7   :  { %v1373_v31 = vpop.f32.mrb[4].mxu0  ;;  %v237_v34 = vld [vmem:[#allocation2 + $0x8] sm:$0xff] }
  0xe8   :  { %222 = vst.msk [vmem:[#allocation2 + $0x28] sm:$0xff] %vm216_vm8, %v1373_v31  ;;  %v177_v32 = vpop.f32.mrb[5].mxu0  ;;  %v236_v33 = vld [vmem:[#allocation2] sm:$0xff] }
  0xe9   :  { %221 = vst.msk [vmem:[#allocation2 + $0x20] sm:$0xff] %vm216_vm8, %v177_v32  ;;  %1387 = vmatprep.mubr.msk.f32.mxu1 %vm216_vm8, %v236_v33  ;;  %v1559_v32 = vmov -1e+30  }
  0xea   :  { %1388 = vmatmul.mubr.msk.f32.vlgmr.msra.gmra.mrb[0].mxu1 %vm216_vm8, %v237_v34  ;;  %230 = vst.msk [vmem:[#allocation3] sm:$0xff] %vm229_vm10, %v1559_v32  ;;  %231 = vst.msk [vmem:[#allocation3 + $0x8] sm:$0xff] %vm229_vm10, %v1559_v32 }
  0xeb   :  { %v1376_v35 = vpop.f32.mrb[6].mxu0  ;;  %1471 = vmatpush3.bf16.msk.msra.mxu1 %vm1704_vm7, %v1555_v18  ;;  %v239_v38 = vld [vmem:[#allocation2 + $0x18] sm:$0xff] }
  0xec   :  { %224 = vst.msk [vmem:[#allocation2 + $0x38] sm:$0xff] %vm216_vm8, %v1376_v35  ;;  %v187_v36 = vpop.f32.mrb[7].mxu0  ;;  %v238_v37 = vld [vmem:[#allocation2 + $0x10] sm:$0xff]  ;;  %1473 = vmatprep.subr.msk.bf16.mxu1 %vm1704_vm7, %v1555_v18 }
  0xed   :  { %223 = vst.msk [vmem:[#allocation2 + $0x30] sm:$0xff] %vm216_vm8, %v187_v36  ;;  %1390 = vmatprep.mubr.msk.f32.mxu1 %vm216_vm8, %v238_v37 }
  0xee   :  { %1391 = vmatmul.mubr.msk.f32.gmra.mrb[2].mxu1 %vm216_vm8, %v239_v38 }
  0xef   :  { %v241_v40 = vld [vmem:[#allocation2 + $0x28] sm:$0xff]  ;;  %v1379_v43 = vpop.f32.mrb[8].mxu0 }
  0xf0   :  { %v240_v39 = vld [vmem:[#allocation2 + $0x20] sm:$0xff]  ;;  %226 = vst.msk [vmem:[#allocation2 + $0x48] sm:$0xff] %vm216_vm8, %v1379_v43  ;;  %v197_v44 = vpop.f32.mrb[9].mxu0 }
  0xf1   :  { %1397 = vmatprep.mubr.msk.f32.mxu1 %vm216_vm8, %v240_v39  ;;  %225 = vst.msk [vmem:[#allocation2 + $0x40] sm:$0xff] %vm216_vm8, %v197_v44  ;;  %v646_v38 = vld [vmem:[#allocation3] sm:$0xff] }
  0xf2   :  { %1398 = vmatmul.mubr.msk.f32.vlgmr.msra.gmra.mrb[4].mxu1 %vm216_vm8, %v241_v40 }
  0xf3   :  { %1475 = vmatpush3.bf16.msk.msra.mxu1 %vm1704_vm7, %v1555_v18  ;;  %v243_v42 = vld [vmem:[#allocation2 + $0x38] sm:$0xff]  ;;  %v1382_v45 = vpop.f32.mrb[10].mxu0  ;;  %vm973_vm7 = vcmask 228352  }
  0xf4   :  { %v242_v41 = vld [vmem:[#allocation2 + $0x30] sm:$0xff]  ;;  %228 = vst.msk [vmem:[#allocation2 + $0x58] sm:$0xff] %vm216_vm8, %v1382_v45  ;;  %v207_v46 = vpop.f32.mrb[11].mxu0  ;;  %1476 = vmatprep.subr.bf16.mxu1 %v1556_v50 }
  0xf5   :  { %1400 = vmatprep.mubr.msk.f32.mxu1 %vm216_vm8, %v242_v41  ;;  %227 = vst.msk [vmem:[#allocation2 + $0x50] sm:$0xff] %vm216_vm8, %v207_v46 }
  0xf6   :  { %1401 = vmatmul.mubr.msk.f32.gmra.mrb[6].mxu1 %vm216_vm8, %v243_v42 }
  0xf7   :  { %v245_v48 = vld [vmem:[#allocation2 + $0x48] sm:$0xff] }
  0xf8   :  { %v244_v47 = vld [vmem:[#allocation2 + $0x40] sm:$0xff] }
  0xf9   :  { %1407 = vmatprep.mubr.msk.f32.mxu1 %vm216_vm8, %v244_v47 }
  0xfa   :  { %1408 = vmatmul.mubr.msk.f32.vlgmr.msra.gmra.mrb[8].mxu1 %vm216_vm8, %v245_v48  ;;  %v647_v48 = vld [vmem:[#allocation3 + $0x8] sm:$0xff] }
  0xfb   :  { %v247_v51 = vld [vmem:[#allocation2 + $0x58] sm:$0xff] }
  0xfc   :  { %v246_v49 = vld [vmem:[#allocation2 + $0x50] sm:$0xff] }
  0xfd   :  { %1410 = vmatprep.mubr.msk.f32.mxu1 %vm216_vm8, %v246_v49 }
  0xfe   :  { %1411 = vmatmul.mubr.msk.f32.gmra.mrb[10].mxu1 %vm216_vm8, %v247_v51 }
  0xff   :  { %1421 = vmatprep.mubr.msk.f32.mxu1 %vm1557_vm9, %v1558_v52 }
 0x1bd   :  { %v1389_v53 = vpop.f32.mrb[0].mxu1 }
 0x1be   :  { %v353_v54 = vpop.f32.mrb[1].mxu1 }
 0x1c1   :  { %v1392_v55 = vpop.f32.mrb[2].mxu1 }
 0x1c2   :  { %v363_v56 = vpop.f32.mrb[3].mxu1 }
 0x1c5   :  { %v1399_v57 = vpop.f32.mrb[4].mxu1 }
 0x1c6   :  { %v568_v58 = vmul.f32 %v1399_v57, %v1389_v53  ;;  %v450_v59 = vpop.f32.mrb[5].mxu1 }
 0x1c7   :  { %v567_v60 = vmul.f32 %v450_v59, %v353_v54  ;;  %v1568_v59 = vmov 0  }
 0x1c9   :  { %v1477_v61 = vpack.c.bf16 %v568_v58, %v567_v60  ;;  %v1402_v62 = vpop.f32.mrb[6].mxu1  ;;  %v1567_v58 = vmov 1.0   ;;  %v811_v60 = vsel %vm273_vm14, 1, %v1568_v59 }
 0x1ca   :  { %v570_v63 = vmul.f32 %v1402_v62, %v1392_v55  ;;  %v460_v0 = vpop.f32.mrb[7].mxu1 }
 0x1cb   :  { %v569_v1 = vmul.f32 %v460_v0, %v363_v56  ;;  %1478 = vmatpush3.bf16.msra.mxu1 %v1477_v61  ;;  %v815_v61 = vrot.slane %v811_v60, %v1677_v17 }
 0x1cc   :  { %1479 = vmatprep.subr.bf16.mxu1 %v1556_v50 }
 0x1cd   :  { %v1480_v2 = vpack.c.bf16 %v570_v63, %v569_v1  ;;  %v1761_v5 = vpop.f32.mrb[8].mxu1  ;;  %vm816_vm15 = vcmp.eq.s32.totalorder %v815_v61, 1 }
 0x1ce   :  { %v1763_v6 = vpop.f32.mrb[9].mxu1 }
 0x1cf   :  { %1481 = vmatpush3.bf16.msra.mxu1 %v1480_v2 }
 0x1d1   :  { %v1765_v7 = vpop.f32.mrb[10].mxu1 }
 0x1d2   :  { %1422 = vmatmul.mubr.msk.f32.vlgmr.msra.gmra.mrb[12].mxu1 %vm48_vm0, %v566_v3  ;;  %v1767_v8 = vpop.f32.mrb[11].mxu1 }
 0x1d3   :  { %1433 = vmatprep.mubr.msk.f32.mxu1 %vm1691_vm5, %v1567_v58 }
 0x2a5   :  { %v642_v11 = vpop.f32.mrb[12].mxu1 }
 0x2a6   :  { %v1773_v12 = vadd.f32 %v642_v11, %v571_v9  ;;  %v1423_v14 = vpop.f32.mrb[13].mxu1 }
 0x2a8   :  { %v671_v18 = vrot.slane %v1773_v12, %v670_v10  ;;  %v651_v19 = vrot.slane %v1773_v12, %v1677_v17  ;;  %v661_v24 = vrot.slane %v1773_v12, %v660_v15  ;;  %v681_v28 = vrot.slane %v1773_v12, %v680_v25  ;;  %v821_v25 = vld [vmem:[#allocation4 + $0x8] sm:$0xff] }
 0x2aa   :  { %v672_v20 = vsel %vm1691_vm5, %v671_v18, -1e+30  ;;  %v652_v21 = vsel %vm1691_vm5, %v651_v19, -1e+30  ;;  %v653_v26 = vsel %vm1695_vm6, %v651_v19, -1e+30 }
 0x2ab   :  { %674 = vmax.xlane.f32.xlu1 %v672_v20  ;;  %654 = vmax.xlane.f32.xlu0 %v652_v21  ;;  %v662_v27 = vsel %vm1691_vm5, %v661_v24, -1e+30  ;;  %v682_v29 = vsel %vm1691_vm5, %v681_v28, -1e+30  ;;  %v663_v30 = vsel %vm1695_vm6, %v661_v24, -1e+30 }
 0x2ac   :  { %v683_v13 = vsel %vm1695_vm6, %v681_v28, -1e+30  ;;  %v673_v31 = vsel %vm1695_vm6, %v671_v18, -1e+30 }
 0x2af   :  { %656 = vmax.xlane.f32.xlu1 %v653_v26  ;;  %664 = vmax.xlane.f32.xlu0 %v662_v27  ;;  %v820_v26 = vld [vmem:[#allocation4] sm:$0xff] }
 0x2b3   :  { %684 = vmax.xlane.f32.xlu1 %v682_v29  ;;  %666 = vmax.xlane.f32.xlu0 %v663_v30 }
 0x2b7   :  { %686 = vmax.xlane.f32.xlu1 %v683_v13  ;;  %676 = vmax.xlane.f32.xlu0 %v673_v31 }
 0x338   :  { %v675_v33 = vpop.xlane.xlu1 %674  ;;  %v655_v34 = vpop.xlane.xlu0 %654 }
 0x33c   :  { %v657_v35 = vpop.xlane.xlu1 %656  ;;  %v665_v36 = vpop.xlane.xlu0 %664 }
 0x33d   :  { %v689_v37 = vsel %vm688_vm11, %v655_v34, %v665_v36 }
 0x33e   :  { %v692_v40 = vsel %vm691_vm12, %v689_v37, %v675_v33 }
 0x340   :  { %v685_v39 = vpop.xlane.xlu1 %684  ;;  %v667_v41 = vpop.xlane.xlu0 %666 }
 0x341   :  { %v695_v42 = vsel %vm694_vm13, %v692_v40, %v685_v39  ;;  %v690_v45 = vsel %vm688_vm11, %v657_v35, %v667_v41 }
 0x342   :  { %v697_v43 = vmax.f32 %v646_v38, %v695_v42 }
 0x344   :  { %v699_v44 = vsub.f32 %v646_v38, %v697_v43  ;;  %1059 = vst.msk [vmem:[#allocation3] sm:$0xff] %vm229_vm10, %v697_v43  ;;  %v687_v46 = vpop.xlane.xlu1 %686  ;;  %705 = vxpose.xlu0.b32.start [1/2] (short) (narrow) %v697_v43, 8  ;;  %v677_v47 = vpop.xlane.xlu0 %676 }
 0x345   :  { %v693_v49 = vsel %vm691_vm12, %v690_v45, %v677_v47 }
 0x346   :  { %v701_v50 = vmul.f32 1.442695, %v699_v44  ;;  %v696_v51 = vsel %vm694_vm13, %v693_v49, %v687_v46 }
 0x347   :  { %v698_v52 = vmax.f32 %v647_v48, %v696_v51 }
 0x348   :  { %1521 = vpow2.f32 %v701_v50  ;;  %v977_v50 = vld [vmem:[#allocation5 + $0x8] sm:$0xff] }
 0x349   :  { %706 = vxpose.xlu0.b32.end [2/2] (short) (narrow) %v698_v52, 8  ;;  %v700_v53 = vsub.f32 %v647_v48, %v698_v52  ;;  %1060 = vst.msk [vmem:[#allocation3 + $0x8] sm:$0xff] %vm229_vm10, %v698_v52  ;;  %v976_v52 = vld [vmem:[#allocation5] sm:$0xff] }
 0x34b   :  { %v703_v54 = vmul.f32 1.442695, %v700_v53 }
 0x34d   :  { %1523 = vpow2.f32 %v703_v54 }
 0x352   :  { %v1806_v55 = vpop.eup %1521 }
 0x353   :  { %915 = vrot.lane.b32.xlu1 %v1806_v55, %s1560_s2  ;;  %v822_v30 = vmul.f32 %v1806_v55, %v820_v26 }
 0x357   :  { %v1810_v56 = vpop.eup %1523 }
 0x358   :  { %917 = vrot.lane.b32.xlu1 %v1810_v56, %s1560_s2  ;;  %v823_v27 = vmul.f32 %v1810_v56, %v821_v25 }
 0x35c   :  { %921 = vrot.lane.b32.xlu1 %v1806_v55, %s1561_s7 }
 0x360   :  { %923 = vrot.lane.b32.xlu1 %v1810_v56, %s1561_s7 }
 0x364   :  { %927 = vrot.lane.b32.xlu1 %v1806_v55, %s1562_s14 }
 0x368   :  { %929 = vrot.lane.b32.xlu1 %v1810_v56, %s1562_s14 }
 0x36c   :  { %933 = vrot.lane.b32.xlu1 %v1806_v55, %s1563_s15 }
 0x370   :  { %935 = vrot.lane.b32.xlu1 %v1810_v56, %s1563_s15 }
 0x372   :  { %941 = vrot.lane.b32.xlu0 %v1810_v56, %s1564_s16 }
 0x374   :  { %939 = vrot.lane.b32.xlu1 %v1806_v55, %s1564_s16 }
 0x378   :  { %945 = vrot.lane.b32.xlu1 %v1806_v55, %s1565_s17 }
 0x37c   :  { %947 = vrot.lane.b32.xlu1 %v1810_v56, %s1565_s17 }
 0x380   :  { %951 = vrot.lane.b32.xlu1 %v1806_v55, %s1566_s18 }
 0x384   :  { %953 = vrot.lane.b32.xlu1 %v1810_v56, %s1566_s18 }
 0x3c5   :  { %v721_v57 = vpop.trf.xlu0  ;;  %v916_v15 = vpop.permute.xlu1 %915 }
 0x3c6   :  { %1429 = vmatmul.mubr.msk.f32.vlgmr.msra.gmra.mrb[12].mxu0 %vm216_vm8, %v721_v57  ;;  %v957_v36 = vsel %vm229_vm10, %v1806_v55, %v916_v15 }
 0x3c7   :  { %1444 = vmatprep.mubr.msk.f32.mxu0 %vm1691_vm5, %v1567_v58  ;;  %vm967_vm5 = vcmask 162816  }
 0x3e4   :  { %v942_v38 = vpop.permute.xlu0 %941 }
 0x499   :  { %v806_v62 = vpop.f32.mrb[12].mxu0 }
 0x49a   :  { %v810_v63 = vsub.f32 %v1773_v12, %v806_v62  ;;  %v1430_v0 = vpop.f32.mrb[13].mxu0  ;;  %v1132_v62 = vld [vmem:[%s1947_s3] sm:$0xff] }
 0x49c   :  { %v817_v1 = vsel %vm816_vm15, %v810_v63, -1e+30  ;;  %v1133_v63 = vld [vmem:[%s1947_s3 + $0x8] sm:$0xff] }
 0x49d   :  { %v818_v2 = vmul.f32 1.442695, %v817_v1  ;;  %v1493_v1 = vpack.c.bf16 %v1133_v63, %v1132_v62 }
 0x49f   :  { %1525 = vpow2.f32 %v818_v2  ;;  %v1134_v2 = vld [vmem:[%s1947_s3 + $0x10] sm:$0xff] }
 0x4a9   :  { %v1526_v3 = vpop.eup %1525 }
 0x4aa   :  { %1431 = vmatprep.subr.mxu1 %v1526_v3  ;;  %v905_v9 = vrot.slane %v1526_v3, 4 }
 0x4ab   :  { %1432 = vmatpush3.xpose.msra.mxu1 %v1526_v3 }
 0x4ac   :  { %v908_v22 = vsel %vm907_vm2, %v1526_v3, %v905_v9  ;;  %1495 = vmatprep.subr.msk.bf16.mxu1 %vm1627_vm1, %v1493_v1  ;;  %v1135_v3 = vld [vmem:[%s1947_s3 + $0x18] sm:$0xff] }
 0x4ad   :  { %v909_v16 = vmul.f32 %v908_v22, %v1763_v6  ;;  %v910_v10 = vmul.f32 %v1761_v5, %v908_v22  ;;  %v911_v17 = vmul.f32 %v908_v22, %v1767_v8  ;;  %v912_v11 = vmul.f32 %v1765_v7, %v908_v22  ;;  %v918_v6 = vpop.permute.xlu1 %917 }
 0x4ae   :  { %1434 = vmatmul.mubr.msk.f32.vlgmr.msra.gmra.mrb[14].mxu1 %vm1695_vm6, %v1567_v58  ;;  %v958_v33 = vsel %vm229_vm10, %v1810_v56, %v918_v6  ;;  %v1499_v9 = vpack.c.bf16 %v1135_v3, %v1134_v2 }
 0x4af   :  { %v1485_v12 = vpack.c.bf16 %v910_v10, %v909_v16  ;;  %v1489_v14 = vpack.c.bf16 %v912_v11, %v911_v17  ;;  %1498 = vmatpush3.bf16.xpose.msk.msra.mxu1 %vm1627_vm1, %v1493_v1 }
 0x4b0   :  { %1501 = vmatprep.subr.msk.bf16.mxu1 %vm1627_vm1, %v1499_v9 }
 0x4b1   :  { %1486 = vmatprep.subr.bf16.mxu0 %v1485_v12  ;;  %v922_v18 = vpop.permute.xlu1 %921 }
 0x4b2   :  { %1488 = vmatpush3.bf16.xpose.msra.mxu0 %v1485_v12  ;;  %v960_v40 = vsel %vm959_vm3, %v957_v36, %v922_v18 }
 0x4b3   :  { %1490 = vmatprep.subr.bf16.mxu0 %v1489_v14 }
 0x4b5   :  { %v924_v5 = vpop.permute.xlu1 %923 }
 0x4b6   :  { %v961_v34 = vsel %vm959_vm3, %v958_v33, %v924_v5 }
 0x4b7   :  { %1504 = vmatpush3.bf16.xpose.msk.msra.mxu1 %vm1627_vm1, %v1499_v9 }
 0x4b9   :  { %v928_v19 = vpop.permute.xlu1 %927 }
 0x4ba   :  { %1492 = vmatpush3.bf16.xpose.msra.mxu0 %v1489_v14  ;;  %v963_v42 = vsel %vm962_vm4, %v960_v40, %v928_v19 }
 0x4bd   :  { %v930_v8 = vpop.permute.xlu1 %929 }
 0x4be   :  { %v964_v35 = vsel %vm962_vm4, %v961_v34, %v930_v8 }
 0x4c1   :  { %1445 = vmatmul.mubr.msk.f32.vlgmr.msra.gmra.mrb[14].mxu0 %vm1695_vm6, %v1567_v58  ;;  %v934_v20 = vpop.permute.xlu1 %933  ;;  %vm970_vm6 = vcmask 195584  }
 0x4c2   :  { %v965_v44 = vsel %vm216_vm8, %v963_v42, %v934_v20 }
 0x4c5   :  { %v936_v7 = vpop.permute.xlu1 %935 }
 0x4c6   :  { %v966_v37 = vsel %vm216_vm8, %v964_v35, %v936_v7 }
 0x4c7   :  { %v969_v45 = vsel %vm967_vm5, %v966_v37, %v942_v38  ;;  %v1299_v37 = vld [vmem:[%s1948_s4] ss:$0 sm:$0xff] }
 0x4c9   :  { %v940_v21 = vpop.permute.xlu1 %939 }
 0x4ca   :  { %v968_v46 = vsel %vm967_vm5, %v965_v44, %v940_v21 }
 0x4cd   :  { %v946_v24 = vpop.permute.xlu1 %945 }
 0x4ce   :  { %v971_v48 = vsel %vm970_vm6, %v968_v46, %v946_v24 }
 0x4d1   :  { %v948_v28 = vpop.permute.xlu1 %947 }
 0x4d2   :  { %v972_v47 = vsel %vm970_vm6, %v969_v45, %v948_v28 }
 0x4d5   :  { %v952_v32 = vpop.permute.xlu1 %951 }
 0x4d6   :  { %v974_v51 = vsel %vm973_vm7, %v971_v48, %v952_v32 }
 0x4d7   :  { %v978_v56 = vmul.f32 %v976_v52, %v974_v51 }
 0x4d9   :  { %v954_v43 = vpop.permute.xlu1 %953 }
 0x4da   :  { %v975_v49 = vsel %vm973_vm7, %v972_v47, %v954_v43 }
 0x4db   :  { %v979_v54 = vmul.f32 %v977_v50, %v975_v49 }
 0x581   :  { %v1435_v29 = vpop.f32.mrb[14].mxu1 }
 0x582   :  { %v900_v23 = vadd.f32 %v1435_v29, %v823_v27  ;;  %v890_v13 = vpop.f32.mrb[15].mxu1 }
 0x583   :  { %v899_v31 = vadd.f32 %v890_v13, %v822_v30 }
 0x584   :  { %903 = vst.msk [vmem:[#allocation4 + $0x8] sm:$0xff] %vm229_vm10, %v900_v23 }
 0x585   :  { %902 = vst.msk [vmem:[#allocation4] sm:$0xff] %vm229_vm10, %v899_v31 }
 0x58b   :  { %v1065_v39 = vld [vmem:[#allocation4 + $0x8] sm:$0xff] }
 0x58c   :  { %v1067_v41 = vadd.f32 1e-16, %v1065_v39  ;;  %v1064_v53 = vld [vmem:[#allocation4] sm:$0xff] }
 0x58d   :  { %v1066_v59 = vadd.f32 1e-16, %v1064_v53 }
 0x58e   :  { %1527 = vrcp.f32 %v1067_v41 }
 0x58f   :  { %1529 = vrcp.f32 %v1066_v59 }
 0x594   :  { %v1446_v55 = vpop.f32.mrb[14].mxu0 }
 0x595   :  { %v1056_v57 = vadd.f32 %v1446_v55, %v979_v54  ;;  %v1046_v58 = vpop.f32.mrb[15].mxu0 }
 0x596   :  { %v1055_v60 = vadd.f32 %v1046_v58, %v978_v56 }
 0x597   :  { %1058 = vst.msk [vmem:[#allocation5 + $0x8] sm:$0xff] %vm48_vm0, %v1056_v57 }
 0x598   :  { %v1528_v61 = vpop.eup %1527  ;;  %1057 = vst.msk [vmem:[#allocation5] sm:$0xff] %vm48_vm0, %v1055_v60 }
 0x599   :  { %1092 = vrot.lane.b32.xlu0 %v1528_v61, %s1563_s15  ;;  %1074 = vrot.lane.b32.xlu1 %v1528_v61, %s1560_s2  ;;  %v1530_v0 = vpop.eup %1529 }
 0x59d   :  { %1098 = vrot.lane.b32.xlu0 %v1528_v61, %s1564_s16  ;;  %1080 = vrot.lane.b32.xlu1 %v1528_v61, %s1561_s7 }
 0x59e   :  { %v1129_v34 = vld [vmem:[#allocation5 + $0x8] sm:$0xff] }
 0x59f   :  { %v1128_v32 = vld [vmem:[#allocation5] sm:$0xff] }
 0x5a1   :  { %1104 = vrot.lane.b32.xlu0 %v1528_v61, %s1565_s17  ;;  %1086 = vrot.lane.b32.xlu1 %v1528_v61, %s1562_s14 }
 0x5a5   :  { %1110 = vrot.lane.b32.xlu0 %v1528_v61, %s1566_s18  ;;  %1072 = vrot.lane.b32.xlu1 %v1530_v0, %s1560_s2 }
 0x5a9   :  { %1078 = vrot.lane.b32.xlu1 %v1530_v0, %s1561_s7 }
 0x5ad   :  { %1084 = vrot.lane.b32.xlu1 %v1530_v0, %s1562_s14 }
 0x5b1   :  { %1090 = vrot.lane.b32.xlu1 %v1530_v0, %s1563_s15 }
 0x5b5   :  { %1096 = vrot.lane.b32.xlu1 %v1530_v0, %s1564_s16 }
 0x5b9   :  { %1102 = vrot.lane.b32.xlu1 %v1530_v0, %s1565_s17 }
 0x5bd   :  { %1108 = vrot.lane.b32.xlu1 %v1530_v0, %s1566_s18 }
 0x60b   :  { %v1075_v22 = vpop.permute.xlu1 %1074  ;;  %v1093_v11 = vpop.permute.xlu0 %1092 }
 0x60c   :  { %v1115_v6 = vsel %vm229_vm10, %v1528_v61, %v1075_v22 }
 0x60f   :  { %v1081_v16 = vpop.permute.xlu1 %1080  ;;  %v1099_v15 = vpop.permute.xlu0 %1098 }
 0x610   :  { %v1117_v4 = vsel %vm959_vm3, %v1115_v6, %v1081_v16 }
 0x613   :  { %v1087_v10 = vpop.permute.xlu1 %1086  ;;  %v1105_v19 = vpop.permute.xlu0 %1104 }
 0x614   :  { %v1119_v18 = vsel %vm962_vm4, %v1117_v4, %v1087_v10 }
 0x615   :  { %v1121_v8 = vsel %vm216_vm8, %v1119_v18, %v1093_v11 }
 0x616   :  { %v1123_v7 = vsel %vm967_vm5, %v1121_v8, %v1099_v15 }
 0x617   :  { %v1073_v17 = vpop.permute.xlu1 %1072  ;;  %v1111_v26 = vpop.permute.xlu0 %1110  ;;  %v1125_v27 = vsel %vm970_vm6, %v1123_v7, %v1105_v19 }
 0x618   :  { %v1114_v21 = vsel %vm229_vm10, %v1530_v0, %v1073_v17  ;;  %v1127_v23 = vsel %vm973_vm7, %v1125_v27, %v1111_v26 }
 0x619   :  { %v1131_v36 = vmul.f32 %v1129_v34, %v1127_v23 }
 0x61b   :  { %v1079_v12 = vpop.permute.xlu1 %1078 }
 0x61c   :  { %v1116_v24 = vsel %vm959_vm3, %v1114_v21, %v1079_v12 }
 0x61f   :  { %v1085_v14 = vpop.permute.xlu1 %1084 }
 0x620   :  { %v1118_v28 = vsel %vm962_vm4, %v1116_v24, %v1085_v14 }
 0x623   :  { %v1091_v5 = vpop.permute.xlu1 %1090 }
 0x624   :  { %v1120_v29 = vsel %vm216_vm8, %v1118_v28, %v1091_v5 }
 0x627   :  { %v1097_v20 = vpop.permute.xlu1 %1096 }
 0x628   :  { %v1122_v30 = vsel %vm967_vm5, %v1120_v29, %v1097_v20 }
 0x62b   :  { %v1103_v25 = vpop.permute.xlu1 %1102 }
 0x62c   :  { %v1124_v13 = vsel %vm970_vm6, %v1122_v30, %v1103_v25 }
 0x62f   :  { %v1109_v31 = vpop.permute.xlu1 %1108 }
 0x630   :  { %v1126_v33 = vsel %vm973_vm7, %v1124_v13, %v1109_v31 }
 0x631   :  { %v1130_v35 = vmul.f32 %v1128_v32, %v1126_v33 }
 0x633   :  { %1455 = vmatprep.mubr.msk.f32.mxu1 %vm48_vm0, %v1130_v35 }
 0x634   :  { %1456 = vmatmul.mubr.msk.f32.vlgmr.msra.gmra.mrb[16].mxu1 %vm48_vm0, %v1131_v36 }
 0x707   :  { %v1457_v38 = vpop.f32.mrb[16].mxu1 }
 0x708   :  { %v1233_v39 = vadd.f32 %v1457_v38, %v1299_v37  ;;  %v1227_v40 = vpop.f32.mrb[17].mxu1 }
 0x709   :  { %v1228_v41 = vadd.f32 %v1299_v37, %v1227_v40 }
 0x70a   :  { %1237 = vst.msk [vmem:[#allocation6 + $0x8] sm:$0xff] %vm48_vm0, %v1233_v39 }
 0x70b   :  { %1236 = vst.msk [vmem:[#allocation6] sm:$0xff] %vm48_vm0, %v1228_v41 }
 0x70c   :  { %1542 = shalt.err (!%p1539_p4)
}
 0x70d   :  { %s1543_s30 = scalar_lea.hbm %s1952_s8, 256 }
 0x70e   :  { %p1544_p5 = scmp.ne.s32.totalorder %s1952_s8, %s1543_s30  ;;  %p1547_p6 = scmp.lt.u32.totalorder %s1543_s30, %s1952_s8 }
 0x710   :  { %p1549_p7 = pnand %p1547_p6, %p1544_p5 }
 0x712   :  { %1552 = shalt.err (!%p1549_p7)
}
 0x713   :  { %s1570_s11 = smov 128  }
 0x714   :  { %1249 = dma.vmem_to_hbm [thread:$0]  %s1244_s28, 256, %s1952_s8, [#allocation7], %s1570_s11, %s1570_s11, %s1561_s7  }
 0x715   :  { %1553 = dma.done.wait [#allocation7], 256  }
 0x716   :  { %1554 = vsyncadd [#allocation7], 4294967040 }
 0x717   :  { %1253 = vsyncpa [#allocation7], 1 }

</bundles_post_ra>
